<compile_context>
chip_gen: v5e
topology: v5e:2x2
jax: 0.10.0
libtpu: 0.0.40
codegen_flags: <defaults>
</compile_context>

<pallas_src>
import functools

import jax
import jax.numpy as jnp
from jax.experimental import pallas as pl
from jax.experimental.pallas import tpu as pltpu


def _round_up(n, m):
    return ((n + m - 1) // m) * m


def _mlp_head(x_ref, w1_ref, b1_ref, w2_ref, b2_ref, wh_ref, bh_ref):
    """Shared trunk: two relu-MLP layers + fused (adv|val) head matmul."""
    x = x_ref[...]

    # fc1 + relu  (bias add / relu in f32, cast back for the next MXU op)
    h1 = jnp.dot(x, w1_ref[...], preferred_element_type=jnp.float32) + b1_ref[...]
    h1 = jnp.maximum(h1, 0.0).astype(w2_ref.dtype)

    # fc2 + relu
    h2 = jnp.dot(h1, w2_ref[...], preferred_element_type=jnp.float32) + b2_ref[...]
    h2 = jnp.maximum(h2, 0.0).astype(wh_ref.dtype)

    # fused advantage/value head: columns [0:A]=adv, [A]=val, rest zero-padded
    return jnp.dot(h2, wh_ref[...], preferred_element_type=jnp.float32) + bh_ref[...]


def dueling_kernel_tiled(x_ref, w1_ref, b1_ref, w2_ref, b2_ref, wh_ref, bh_ref,
                         out_ref, *, A):
    """Multi-tile path. Output lanes: [0:A] = adv + val, [A] = row-sum(adv)."""
    head = _mlp_head(x_ref, w1_ref, b1_ref, w2_ref, b2_ref, wh_ref, bh_ref)

    val = head[:, A:A + 1]                                     # (TB, 1)
    col = jax.lax.broadcasted_iota(jnp.int32, head.shape, 1)   # lane index
    adv_sum = jnp.sum(jnp.where(col < A, head, 0.0), axis=1, keepdims=True)

    # lane-dense output tile: [ adv + val | row adv-sum | zeros ... ]
    out_ref[...] = jnp.where(col < A, head + val,
                             jnp.where(col == A, adv_sum, 0.0))


def dueling_kernel_fused(x_ref, w1_ref, b1_ref, w2_ref, b2_ref, wh_ref, bh_ref,
                         out_ref, *, A, valid_b):
    """Single-tile path: global adv mean computed fully inside the kernel."""
    head = _mlp_head(x_ref, w1_ref, b1_ref, w2_ref, b2_ref, wh_ref, bh_ref)

    val = head[:, A:A + 1]                                     # (TB, 1)
    col = jax.lax.broadcasted_iota(jnp.int32, head.shape, 1)   # lane index
    row = jax.lax.broadcasted_iota(jnp.int32, head.shape, 0)   # sublane index

    # mask padded batch rows (they see nonzero biases) and padded lanes
    adv_valid = jnp.where((col < A) & (row < valid_b), head, 0.0)
    adv_mean = jnp.sum(adv_valid) * (1.0 / float(valid_b * A))

    out_ref[...] = jnp.where(col < A, head + val - adv_mean, 0.0)


def init_params(key, input_dim, output_dim, hidden_dim):
    """nn.Linear-style init. Weights stored pre-transposed as (in, out)."""
    def linear(k, fan_in, fan_out):
        kw, kb = jax.random.split(k)
        bound = 1.0 / jnp.sqrt(fan_in)
        w = jax.random.uniform(kw, (fan_in, fan_out), jnp.float32, -bound, bound)
        b = jax.random.uniform(kb, (1, fan_out), jnp.float32, -bound, bound)
        return w, b

    k1, k2, k3, k4 = jax.random.split(key, 4)
    w1, b1 = linear(k1, input_dim, hidden_dim)
    w2, b2 = linear(k2, hidden_dim, hidden_dim)
    wa, ba = linear(k3, hidden_dim, output_dim)
    wv, bv = linear(k4, hidden_dim, 1)
    return {"w1": w1, "b1": b1, "w2": w2, "b2": b2,
            "wa": wa, "ba": ba, "wv": wv, "bv": bv}


def pack_params(params, input_dim, output_dim, hidden_dim,
                compute_dtype=jnp.float32):
    """Zero-pad to lane-dense (multiples of 128) shapes and fuse adv/val heads.

    Zero-padding weights AND biases keeps numerics exact: padded hidden units
    stay identically zero through the relus. compute_dtype=jnp.bfloat16 halves
    weight VMEM and uses the bf16-native MXU on v6e/v7x (f32 accumulation);
    biases stay f32.
    """
    IN_P = _round_up(input_dim, 128)
    H_P = _round_up(hidden_dim, 128)
    A = output_dim
    OUT_P = _round_up(A + 1, 128)

    def pad2(a, rows, cols):
        z = jnp.zeros((rows, cols), jnp.float32)
        return z.at[:a.shape[0], :a.shape[1]].set(a)

    wh = jnp.concatenate([params["wa"], params["wv"]], axis=1)   # (H, A+1)
    bh = jnp.concatenate([params["ba"], params["bv"]], axis=1)   # (1, A+1)

    return {
        "w1": pad2(params["w1"], IN_P, H_P).astype(compute_dtype),
        "b1": pad2(params["b1"], 1, H_P),
        "w2": pad2(params["w2"], H_P, H_P).astype(compute_dtype),
        "b2": pad2(params["b2"], 1, H_P),
        "wh": pad2(wh, H_P, OUT_P).astype(compute_dtype),
        "bh": pad2(bh, 1, OUT_P),
        "A": A, "IN_P": IN_P, "H_P": H_P, "OUT_P": OUT_P,
        "input_dim": input_dim, "hidden_dim": hidden_dim,
    }


def dueling_forward(x, packed, *, block_b=512):
    """x: (B, input_dim) float32 -> (B, output_dim) float32."""
    B, in_dim = x.shape
    A, IN_P, H_P, OUT_P = packed["A"], packed["IN_P"], packed["H_P"], packed["OUT_P"]
    cdt = packed["w1"].dtype

    TB = min(block_b, _round_up(max(B, 1), 8))
    B_P = _round_up(B, TB)
    n_tiles = B_P // TB

    # pad batch rows / feature lanes with zeros (padded rows are masked/sliced)
    xp = jnp.zeros((B_P, IN_P), cdt).at[:B, :in_dim].set(x.astype(cdt))

    # VMEM budget: resident weights + double-buffered activation tiles
    w_bytes = (IN_P * H_P + H_P * H_P + H_P * OUT_P) * cdt.itemsize
    act_bytes = TB * IN_P * cdt.itemsize + TB * OUT_P * 4
    vmem_needed = 2 * (w_bytes + act_bytes) + 4 * (2 * H_P + OUT_P) * 4
    vmem_limit = min(max(int(vmem_needed * 1.5) + (4 << 20), 32 << 20), 64 << 20)
    # TODO(synk): for very large hidden_dim (weights > ~48 MiB, esp. v7x's
    # 64 MiB VMEM) add a K-tiling grid axis for w2 instead of full residency.

    flops = 2 * B_P * (IN_P * H_P + H_P * H_P + H_P * OUT_P)
    bytes_accessed = w_bytes + B_P * IN_P * cdt.itemsize + B_P * OUT_P * 4

    const = lambda i: (0, 0)   # weights/biases: same block every grid step
    grid_spec = pltpu.PrefetchScalarGridSpec(
        num_scalar_prefetch=0,
        grid=(n_tiles,),
        in_specs=[
            pl.BlockSpec((TB, IN_P), lambda i: (i, 0)),   # x tile
            pl.BlockSpec((IN_P, H_P), const),             # w1 (resident)
            pl.BlockSpec((1, H_P), const),                # b1
            pl.BlockSpec((H_P, H_P), const),              # w2
            pl.BlockSpec((1, H_P), const),                # b2
            pl.BlockSpec((H_P, OUT_P), const),            # fused head weight
            pl.BlockSpec((1, OUT_P), const),              # fused head bias
        ],
        out_specs=pl.BlockSpec((TB, OUT_P), lambda i: (i, 0)),
    )

    if n_tiles == 1:
        # Whole batch in one tile: finish the dueling combine (incl. the
        # GLOBAL advantage mean) inside the kernel -> no XLA epilogue.
        kernel = functools.partial(dueling_kernel_fused, A=A, valid_b=B)
    else:
        kernel = functools.partial(dueling_kernel_tiled, A=A)

    y = pl.pallas_call(
        kernel,
        out_shape=jax.ShapeDtypeStruct((B_P, OUT_P), jnp.float32),
        grid_spec=grid_spec,
        compiler_params=pltpu.CompilerParams(
            dimension_semantics=("parallel",),   # dual-TC sharding on v7x
            vmem_limit_bytes=vmem_limit,
        ),
        cost_estimate=pl.CostEstimate(
            flops=flops, transcendentals=0, bytes_accessed=bytes_accessed),
    )(xp, packed["w1"], packed["b1"], packed["w2"], packed["b2"],
      packed["wh"], packed["bh"])

    y = y[:B]
    if n_tiles == 1:
        return y[:, :A]

    # PyTorch semantics: GLOBAL scalar mean over all (B, A) advantage values.
    # Per-row adv sums are in lane A; finish the tiny global reduction and the
    # scalar subtract in XLA so batch tiles stay fully independent/parallel.
    adv_mean = jnp.sum(y[:, A]) / (B * A)
    return y[:, :A] - adv_mean


def dueling_reference(x, p):
    h1 = jnp.maximum(x @ p["w1"] + p["b1"], 0.0)
    h2 = jnp.maximum(h1 @ p["w2"] + p["b2"], 0.0)
    adv = h2 @ p["wa"] + p["ba"]
    val = h2 @ p["wv"] + p["bv"]
    return val + adv - jnp.mean(adv)


if __name__ == "__main__":
    input_dim, hidden_dim, output_dim = 16, 32, 4
    key = jax.random.PRNGKey(0)
    k_params, k_x1, k_x2 = jax.random.split(key, 3)

    params = init_params(k_params, input_dim, output_dim, hidden_dim)
    packed = pack_params(params, input_dim, output_dim, hidden_dim)

    # small shape consistent with the module's forward (flat feature vectors);
    # single-tile path -> fully fused in-kernel dueling combine
    x = jax.random.normal(k_x1, (2, input_dim), dtype=jnp.float32)
    out = jax.block_until_ready(dueling_forward(x, packed))
    ref = dueling_reference(x, params)
    assert out.shape == (2, output_dim)
    assert jnp.allclose(out, ref, atol=1e-5, rtol=1e-5), "mismatch vs ref (B=2)"

    # multi-tile path: exercises the batch grid + cross-tile global adv mean
    x2 = jax.random.normal(k_x2, (96, input_dim), dtype=jnp.float32)
    out2 = jax.block_until_ready(dueling_forward(x2, packed, block_b=32))
    ref2 = dueling_reference(x2, params)
    assert out2.shape == (96, output_dim)
    assert jnp.allclose(out2, ref2, atol=1e-5, rtol=1e-5), "mismatch vs ref (B=96)"

    print("KERNEL_OK")
</pallas_src>

<mosaic_0001>
module attributes {stable_mosaic.version = 11 : i64} {
  func.func @dueling_kernel_fused(%arg0: i32, %arg1: memref<8x128xf32, #tpu.memory_space<vmem>>, %arg2: memref<128x128xf32, #tpu.memory_space<vmem>>, %arg3: memref<1x128xf32, #tpu.memory_space<vmem>>, %arg4: memref<128x128xf32, #tpu.memory_space<vmem>>, %arg5: memref<1x128xf32, #tpu.memory_space<vmem>>, %arg6: memref<128x128xf32, #tpu.memory_space<vmem>>, %arg7: memref<1x128xf32, #tpu.memory_space<vmem>>, %arg8: memref<8x128xf32, #tpu.memory_space<vmem>>) attributes {dimension_semantics = [#tpu.dimension_semantics<parallel>], iteration_bounds = array<i64: 1>, scalar_prefetch = 0 : i64, scratch_operands = 0 : i64, tpu.core_type = #tpu.core_type<tc>, window_params = [{transform_indices = @transform_0, window_bounds = array<i64: 8, 128>}, {pipeline_mode = #tpu.pipeline_mode<synchronous>, transform_indices = @transform_1, window_bounds = array<i64: 128, 128>}, {pipeline_mode = #tpu.pipeline_mode<synchronous>, transform_indices = @transform_2, window_bounds = array<i64: 1, 128>}, {pipeline_mode = #tpu.pipeline_mode<synchronous>, transform_indices = @transform_3, window_bounds = array<i64: 128, 128>}, {pipeline_mode = #tpu.pipeline_mode<synchronous>, transform_indices = @transform_4, window_bounds = array<i64: 1, 128>}, {pipeline_mode = #tpu.pipeline_mode<synchronous>, transform_indices = @transform_5, window_bounds = array<i64: 128, 128>}, {pipeline_mode = #tpu.pipeline_mode<synchronous>, transform_indices = @transform_6, window_bounds = array<i64: 1, 128>}, {transform_indices = @transform_7, window_bounds = array<i64: 8, 128>}]} {
    %c0 = arith.constant 0 : index
    %c0_0 = arith.constant 0 : index
    %0 = vector.load %arg1[%c0, %c0_0] : memref<8x128xf32, #tpu.memory_space<vmem>>, vector<8x128xf32>
    %c0_1 = arith.constant 0 : index
    %c0_2 = arith.constant 0 : index
    %1 = vector.load %arg2[%c0_1, %c0_2] : memref<128x128xf32, #tpu.memory_space<vmem>>, vector<128x128xf32>
    %cst = arith.constant dense<0.000000e+00> : vector<8x128xf32>
    %2 = tpu.matmul %0, %1, %cst {dimension_numbers = #tpu.dot_dimension_numbers<[1], [0], [0], [1], [0, 0, 1, 1], [], []>} : vector<8x128xf32>, vector<128x128xf32>, vector<8x128xf32> -> vector<8x128xf32>
    %c0_3 = arith.constant 0 : index
    %c0_4 = arith.constant 0 : index
    %3 = vector.load %arg3[%c0_3, %c0_4] : memref<1x128xf32, #tpu.memory_space<vmem>>, vector<1x128xf32>
    %4 = vector.broadcast %3 : vector<1x128xf32> to vector<8x128xf32>
    %5 = arith.addf %2, %4 : vector<8x128xf32>
    %cst_5 = arith.constant 0.000000e+00 : f32
    %6 = vector.broadcast %cst_5 : f32 to vector<8x128xf32>
    %7 = arith.maximumf %5, %6 : vector<8x128xf32>
    %c0_6 = arith.constant 0 : index
    %c0_7 = arith.constant 0 : index
    %8 = vector.load %arg4[%c0_6, %c0_7] : memref<128x128xf32, #tpu.memory_space<vmem>>, vector<128x128xf32>
    %cst_8 = arith.constant dense<0.000000e+00> : vector<8x128xf32>
    %9 = tpu.matmul %7, %8, %cst_8 {dimension_numbers = #tpu.dot_dimension_numbers<[1], [0], [0], [1], [0, 0, 1, 1], [], []>} : vector<8x128xf32>, vector<128x128xf32>, vector<8x128xf32> -> vector<8x128xf32>
    %c0_9 = arith.constant 0 : index
    %c0_10 = arith.constant 0 : index
    %10 = vector.load %arg5[%c0_9, %c0_10] : memref<1x128xf32, #tpu.memory_space<vmem>>, vector<1x128xf32>
    %11 = vector.broadcast %10 : vector<1x128xf32> to vector<8x128xf32>
    %12 = arith.addf %9, %11 : vector<8x128xf32>
    %cst_11 = arith.constant 0.000000e+00 : f32
    %13 = vector.broadcast %cst_11 : f32 to vector<8x128xf32>
    %14 = arith.maximumf %12, %13 : vector<8x128xf32>
    %c0_12 = arith.constant 0 : index
    %c0_13 = arith.constant 0 : index
    %15 = vector.load %arg6[%c0_12, %c0_13] : memref<128x128xf32, #tpu.memory_space<vmem>>, vector<128x128xf32>
    %cst_14 = arith.constant dense<0.000000e+00> : vector<8x128xf32>
    %16 = tpu.matmul %14, %15, %cst_14 {dimension_numbers = #tpu.dot_dimension_numbers<[1], [0], [0], [1], [0, 0, 1, 1], [], []>} : vector<8x128xf32>, vector<128x128xf32>, vector<8x128xf32> -> vector<8x128xf32>
    %c0_15 = arith.constant 0 : index
    %c0_16 = arith.constant 0 : index
    %17 = vector.load %arg7[%c0_15, %c0_16] : memref<1x128xf32, #tpu.memory_space<vmem>>, vector<1x128xf32>
    %18 = vector.broadcast %17 : vector<1x128xf32> to vector<8x128xf32>
    %19 = arith.addf %16, %18 : vector<8x128xf32>
    %20 = vector.extract_strided_slice %19 {offsets = [0, 4], sizes = [8, 1], strides = [1, 1]} : vector<8x128xf32> to vector<8x1xf32>
    %21 = tpu.iota {dimensions = array<i32: 1>} : vector<8x128xi32>
    %22 = tpu.iota {dimensions = array<i32: 0>} : vector<8x128xi32>
    %c4_i32 = arith.constant 4 : i32
    %23 = vector.broadcast %c4_i32 : i32 to vector<8x128xi32>
    %24 = arith.cmpi slt, %21, %23 : vector<8x128xi32>
    %c2_i32 = arith.constant 2 : i32
    %25 = vector.broadcast %c2_i32 : i32 to vector<8x128xi32>
    %26 = arith.cmpi slt, %22, %25 : vector<8x128xi32>
    %27 = arith.andi %24, %26 : vector<8x128xi1>
    %cst_17 = arith.constant 0.000000e+00 : f32
    %28 = vector.broadcast %cst_17 : f32 to vector<8x128xf32>
    %29 = arith.select %27, %19, %28 : vector<8x128xi1>, vector<8x128xf32>
    %30 = vector.shape_cast %29 : vector<8x128xf32> to vector<1x8x128xf32>
    %cst_18 = arith.constant dense<0.000000e+00> : vector<1xf32>
    %31 = vector.multi_reduction <add>, %30, %cst_18 [1, 2] : vector<1x8x128xf32> to vector<1xf32>
    %32 = vector.shape_cast %31 : vector<1xf32> to vector<1x1x1xf32>
    %33 = vector.extract %32[0, 0, 0] : f32 from vector<1x1x1xf32>
    %cst_19 = arith.constant 1.250000e-01 : f32
    %34 = arith.mulf %33, %cst_19 : f32
    %c4_i32_20 = arith.constant 4 : i32
    %35 = vector.broadcast %c4_i32_20 : i32 to vector<8x128xi32>
    %36 = arith.cmpi slt, %21, %35 : vector<8x128xi32>
    %37 = vector.broadcast %20 : vector<8x1xf32> to vector<8x128xf32>
    %38 = arith.addf %19, %37 : vector<8x128xf32>
    %39 = vector.broadcast %34 : f32 to vector<8x128xf32>
    %40 = arith.subf %38, %39 : vector<8x128xf32>
    %cst_21 = arith.constant 0.000000e+00 : f32
    %41 = vector.broadcast %cst_21 : f32 to vector<8x128xf32>
    %42 = arith.select %36, %40, %41 : vector<8x128xi1>, vector<8x128xf32>
    %c0_22 = arith.constant 0 : index
    %c0_23 = arith.constant 0 : index
    %43 = vector.load %arg8[%c0_22, %c0_23] : memref<8x128xf32, #tpu.memory_space<vmem>>, vector<8x128xf32>
    tpu.vector_store %arg8[%c0_22, %c0_23], %42 {strides = array<i32>} : memref<8x128xf32, #tpu.memory_space<vmem>>, vector<8x128xf32>,
    return
  }
  func.func @transform_0(%arg0: i32) -> (i32, i32) {
    %c0_i32 = arith.constant 0 : i32
    %c0_i32_0 = arith.constant 0 : i32
    return %arg0, %c0_i32 : i32, i32
  }
  func.func @transform_1(%arg0: i32) -> (i32, i32) {
    %c0_i32 = arith.constant 0 : i32
    %c0_i32_0 = arith.constant 0 : i32
    %c0_i32_1 = arith.constant 0 : i32
    return %c0_i32, %c0_i32_0 : i32, i32
  }
  func.func @transform_2(%arg0: i32) -> (i32, i32) {
    %c0_i32 = arith.constant 0 : i32
    %c0_i32_0 = arith.constant 0 : i32
    %c0_i32_1 = arith.constant 0 : i32
    return %c0_i32, %c0_i32_0 : i32, i32
  }
  func.func @transform_3(%arg0: i32) -> (i32, i32) {
    %c0_i32 = arith.constant 0 : i32
    %c0_i32_0 = arith.constant 0 : i32
    %c0_i32_1 = arith.constant 0 : i32
    return %c0_i32, %c0_i32_0 : i32, i32
  }
  func.func @transform_4(%arg0: i32) -> (i32, i32) {
    %c0_i32 = arith.constant 0 : i32
    %c0_i32_0 = arith.constant 0 : i32
    %c0_i32_1 = arith.constant 0 : i32
    return %c0_i32, %c0_i32_0 : i32, i32
  }
  func.func @transform_5(%arg0: i32) -> (i32, i32) {
    %c0_i32 = arith.constant 0 : i32
    %c0_i32_0 = arith.constant 0 : i32
    %c0_i32_1 = arith.constant 0 : i32
    return %c0_i32, %c0_i32_0 : i32, i32
  }
  func.func @transform_6(%arg0: i32) -> (i32, i32) {
    %c0_i32 = arith.constant 0 : i32
    %c0_i32_0 = arith.constant 0 : i32
    %c0_i32_1 = arith.constant 0 : i32
    return %c0_i32, %c0_i32_0 : i32, i32
  }
  func.func @transform_7(%arg0: i32) -> (i32, i32) {
    %c0_i32 = arith.constant 0 : i32
    %c0_i32_0 = arith.constant 0 : i32
    return %arg0, %c0_i32 : i32, i32
  }
}

</mosaic_0001>

<bundles_post_ra>
// kernel: tpu_custom_call.1
= control target key start
LH: loop header
LB: loop body
LE: loop exit
PB: predicated region body
PF: predicated region fallthrough
CT: control target
= control target key end

     0   :  { %12 = vsyncpa [#allocation3], 0  ;;  %s474_s0 = inlined_call_operand.hbm [shape: f32[8,128], index: 0, kind: input, shape index: {}]   ;;  %s475_s1 = inlined_call_operand.hbm [shape: f32[128,128], index: 1, kind: input, shape index: {}]   ;;  %s476_s2 = inlined_call_operand.vmem [shape: f32[1,128], index: 2, kind: input, shape index: {}]   ;;  %s477_s3 = inlined_call_operand.hbm [shape: f32[128,128], index: 3, kind: input, shape index: {}]   ;;  %s478_s4 = inlined_call_operand.vmem [shape: f32[1,128], index: 4, kind: input, shape index: {}]   ;;  %s479_s5 = inlined_call_operand.hbm [shape: f32[128,128], index: 5, kind: input, shape index: {}]   ;;  %s480_s6 = inlined_call_operand.vmem [shape: f32[1,128], index: 6, kind: input, shape index: {}]   ;;  %s481_s7 = inlined_call_operand.hbm [shape: f32[8,128], index: 7, kind: output, shape index: {}]  }
   0x1   :  { %13 = vsyncpa [#allocation6], 0 }
   0x2   :  { %14 = vsyncpa [#allocation9], 0  ;;  %s31_s26 = sshll.u32 %s475_s1, 4  ;;  %s32_s26 = int_to_ptr.hbm [resolvable:$true] %s31_s26 }
   0x3   :  { %15 = vsyncpa [#allocation4], 0  ;;  %s400_s27 = smov [#allocation5]   ;;  %s21_s8 = sshll.u32 %s474_s0, 4  ;;  %s22_s8 = int_to_ptr.hbm [resolvable:$true] %s21_s8 }
   0x4   :  { %s33_s28 = sshll.u32 %s400_s27, 4  ;;  %s401_s9 = smov 128   ;;  %s34_s28 = int_to_ptr.vmem [resolvable:$true] %s33_s28 }
   0x5   :  { %s402_s10 = smov 8   ;;  %s403_s11 = smov [#allocation2]  }
   0x6   :  { %39 = dma.hbm_to_vmem [thread:$0]  %s32_s26, 2048, %s34_s28, [#allocation6], %s401_s9, %s401_s9, %s402_s10  }
   0x7   :  { %s23_s12 = sshll.u32 %s403_s11, 4  ;;  %s46_s15 = sshll.u32 %s477_s3, 4  ;;  %s24_s12 = int_to_ptr.vmem [resolvable:$true] %s23_s12  ;;  %s47_s15 = int_to_ptr.hbm [resolvable:$true] %s46_s15 }
   0x8   :  { %26 = dma.hbm_to_vmem [thread:$0]  %s22_s8, 128, %s24_s12, [#allocation3]  }
   0x9   :  { %s61_s17 = sshll.u32 %s479_s5, 4  ;;  %s404_s18 = smov [#allocation7]   ;;  %s62_s17 = int_to_ptr.hbm [resolvable:$true] %s61_s17 }
   0xa   :  { %s48_s19 = sshll.u32 %s404_s18, 4  ;;  %s405_s0 = smov [#allocation8]   ;;  %s49_s19 = int_to_ptr.vmem [resolvable:$true] %s48_s19 }
   0xb   :  { %54 = dma.hbm_to_vmem [thread:$0]  %s47_s15, 2048, %s49_s19, [#allocation6], %s401_s9, %s401_s9, %s402_s10  }
   0xc   :  { %s63_s20 = sshll.u32 %s405_s0, 4  ;;  %s64_s20 = int_to_ptr.vmem [resolvable:$true] %s63_s20 }
   0xd   :  { %69 = dma.hbm_to_vmem [thread:$0]  %s62_s17, 2048, %s64_s20, [#allocation9], %s401_s9, %s401_s9, %s402_s10  }
   0xe   :  { %392 = dma.done.wait [#allocation3], 128  }
   0xf   :  { %393 = vsyncadd [#allocation3], 4294967168 }
  0x10   :  { %394 = dma.done.wait [#allocation6], 4096  }
  0x11   :  { %395 = vsyncadd [#allocation6], 4294963200 }
  0x12   :  { %396 = dma.done.wait [#allocation9], 2048  }
  0x13   :  { %397 = vsyncadd [#allocation9], 4294965248  ;;  %v104_v0 = vld [vmem:[#allocation5 + $0x78] sm:$0xff]  ;;  %v103_v1 = vld [vmem:[#allocation5 + $0x70] sm:$0xff]  ;;  %v406_v57 = vmov 4   ;;  %v211_v58 = vlaneseq  ;;  %s407_s24 = smov [#allocation10]  }
  0x14   :  { %109 = vmatpush.msra.mxu0 %v104_v0  ;;  %v102_v2 = vld [vmem:[#allocation5 + $0x68] sm:$0xff]  ;;  %v101_v3 = vld [vmem:[#allocation5 + $0x60] sm:$0xff]  ;;  %v145_v4 = vld [vmem:[#allocation7 + $0x78] sm:$0xff]  ;;  %268 = vset.pattern.permute.xlu0 %v406_v57  ;;  %s244_s25 = sshll.u32 %s407_s24, 4  ;;  %s246_s28 = sshll.u32 %s481_s7, 4  ;;  %s245_s25 = int_to_ptr.vmem [resolvable:$true] %s244_s25  ;;  %s247_s28 = int_to_ptr.hbm [resolvable:$true] %s246_s28 }
  0x15   :  { %v100_v5 = vld [vmem:[#allocation5 + $0x58] sm:$0xff]  ;;  %150 = vmatpush.msra.mxu1 %v145_v4  ;;  %v144_v6 = vld [vmem:[#allocation7 + $0x70] sm:$0xff]  ;;  %v143_v7 = vld [vmem:[#allocation7 + $0x68] sm:$0xff]  ;;  %v212_v59 = vand.u32 127, %v211_v58  ;;  %v214_v60 = vshrl.u32 %v211_v58, 7 }
  0x16   :  { %110 = vmatpush.msra.mxu0 %v103_v1  ;;  %v99_v8 = vld [vmem:[#allocation5 + $0x50] sm:$0xff]  ;;  %v142_v9 = vld [vmem:[#allocation7 + $0x60] sm:$0xff]  ;;  %v98_v10 = vld [vmem:[#allocation5 + $0x48] sm:$0xff] }
  0x17   :  { %151 = vmatpush.msra.mxu1 %v144_v6  ;;  %v141_v11 = vld [vmem:[#allocation7 + $0x58] sm:$0xff]  ;;  %v97_v12 = vld [vmem:[#allocation5 + $0x40] sm:$0xff]  ;;  %v140_v13 = vld [vmem:[#allocation7 + $0x50] sm:$0xff]  ;;  %vm215_vm0 = vcmp.lt.s32.totalorder %v212_v59, 4  ;;  %vm216_vm1 = vcmp.lt.s32.totalorder %v214_v60, 2 }
  0x18   :  { %111 = vmatpush.msra.mxu0 %v102_v2  ;;  %v96_v14 = vld [vmem:[#allocation5 + $0x38] sm:$0xff]  ;;  %v139_v15 = vld [vmem:[#allocation7 + $0x48] sm:$0xff]  ;;  %v95_v16 = vld [vmem:[#allocation5 + $0x30] sm:$0xff] }
  0x19   :  { %152 = vmatpush.msra.mxu1 %v143_v7  ;;  %v138_v17 = vld [vmem:[#allocation7 + $0x40] sm:$0xff]  ;;  %v94_v18 = vld [vmem:[#allocation5 + $0x28] sm:$0xff]  ;;  %v137_v19 = vld [vmem:[#allocation7 + $0x38] sm:$0xff] }
  0x1a   :  { %112 = vmatpush.msra.mxu0 %v101_v3  ;;  %v93_v20 = vld [vmem:[#allocation5 + $0x20] sm:$0xff]  ;;  %v136_v21 = vld [vmem:[#allocation7 + $0x30] sm:$0xff]  ;;  %v92_v22 = vld [vmem:[#allocation5 + $0x18] sm:$0xff] }
  0x1b   :  { %153 = vmatpush.msra.mxu1 %v142_v9  ;;  %v135_v23 = vld [vmem:[#allocation7 + $0x28] sm:$0xff]  ;;  %v91_v24 = vld [vmem:[#allocation5 + $0x10] sm:$0xff]  ;;  %v134_v25 = vld [vmem:[#allocation7 + $0x20] sm:$0xff] }
  0x1c   :  { %113 = vmatpush.msra.mxu0 %v100_v5  ;;  %v90_v26 = vld [vmem:[#allocation5 + $0x8] sm:$0xff]  ;;  %v133_v27 = vld [vmem:[#allocation7 + $0x18] sm:$0xff]  ;;  %v89_v28 = vld [vmem:[#allocation5] sm:$0xff] }
  0x1d   :  { %154 = vmatpush.msra.mxu1 %v141_v11  ;;  %v88_v29 = vld [vmem:[#allocation2] sm:$0xff]  ;;  %v132_v30 = vld [vmem:[#allocation7 + $0x10] sm:$0xff]  ;;  %v131_v31 = vld [vmem:[#allocation7 + $0x8] sm:$0xff] }
  0x1e   :  { %114 = vmatpush.msra.mxu0 %v99_v8  ;;  %v130_v32 = vld [vmem:[#allocation7] sm:$0xff]  ;;  %v186_v33 = vld [vmem:[#allocation8 + $0x78] sm:$0xff]  ;;  %v185_v34 = vld [vmem:[#allocation8 + $0x70] sm:$0xff] }
  0x1f   :  { %155 = vmatpush.msra.mxu1 %v140_v13  ;;  %191 = vmatpush.msra.mxu2 %v186_v33  ;;  %v184_v35 = vld [vmem:[#allocation8 + $0x68] sm:$0xff]  ;;  %v183_v36 = vld [vmem:[#allocation8 + $0x60] sm:$0xff]  ;;  %v182_v37 = vld [vmem:[#allocation8 + $0x58] sm:$0xff] }
  0x20   :  { %115 = vmatpush.msra.mxu0 %v98_v10  ;;  %v181_v38 = vld [vmem:[#allocation8 + $0x50] sm:$0xff]  ;;  %v180_v39 = vld [vmem:[#allocation8 + $0x48] sm:$0xff]  ;;  %v179_v40 = vld [vmem:[#allocation8 + $0x40] sm:$0xff] }
  0x21   :  { %156 = vmatpush.msra.mxu1 %v139_v15  ;;  %192 = vmatpush.msra.mxu2 %v185_v34  ;;  %v178_v41 = vld [vmem:[#allocation8 + $0x38] sm:$0xff]  ;;  %v177_v42 = vld [vmem:[#allocation8 + $0x30] sm:$0xff]  ;;  %v176_v43 = vld [vmem:[#allocation8 + $0x28] sm:$0xff] }
  0x22   :  { %116 = vmatpush.msra.mxu0 %v97_v12  ;;  %v175_v44 = vld [vmem:[#allocation8 + $0x20] sm:$0xff]  ;;  %v174_v45 = vld [vmem:[#allocation8 + $0x18] sm:$0xff]  ;;  %v173_v50 = vld [vmem:[#allocation8 + $0x10] sm:$0xff] }
  0x23   :  { %157 = vmatpush.msra.mxu1 %v138_v17  ;;  %193 = vmatpush.msra.mxu2 %v184_v35  ;;  %v269_v46 = vld [vmem:[%s476_s2] ss:$0 sm:$0xff]  ;;  %v172_v51 = vld [vmem:[#allocation8 + $0x8] sm:$0xff]  ;;  %v171_v52 = vld [vmem:[#allocation8] sm:$0xff] }
  0x24   :  { %117 = vmatpush.msra.mxu0 %v96_v14  ;;  %v270_v53 = vld [vmem:[%s478_s4] ss:$0 sm:$0xff]  ;;  %vm217_vm2 = vmand %vm215_vm0, %vm216_vm1 }
  0x25   :  { %158 = vmatpush.msra.mxu1 %v137_v19  ;;  %194 = vmatpush.msra.mxu2 %v183_v36  ;;  %v271_v61 = vld [vmem:[%s480_s6] ss:$0 sm:$0xff] }
  0x26   :  { %118 = vmatpush.msra.mxu0 %v95_v16 }
  0x27   :  { %159 = vmatpush.msra.mxu1 %v136_v21  ;;  %195 = vmatpush.msra.mxu2 %v182_v37 }
  0x28   :  { %119 = vmatpush.msra.mxu0 %v94_v18 }
  0x29   :  { %160 = vmatpush.msra.mxu1 %v135_v23  ;;  %196 = vmatpush.msra.mxu2 %v181_v38 }
  0x2a   :  { %120 = vmatpush.msra.mxu0 %v93_v20 }
  0x2b   :  { %161 = vmatpush.msra.mxu1 %v134_v25  ;;  %197 = vmatpush.msra.mxu2 %v180_v39 }
  0x2c   :  { %121 = vmatpush.msra.mxu0 %v92_v22 }
  0x2d   :  { %162 = vmatpush.msra.mxu1 %v133_v27  ;;  %198 = vmatpush.msra.mxu2 %v179_v40 }
  0x2e   :  { %122 = vmatpush.msra.mxu0 %v91_v24 }
  0x2f   :  { %163 = vmatpush.msra.mxu1 %v132_v30  ;;  %199 = vmatpush.msra.mxu2 %v178_v41 }
  0x30   :  { %123 = vmatpush.msra.mxu0 %v90_v26 }
  0x31   :  { %164 = vmatpush.msra.mxu1 %v131_v31  ;;  %200 = vmatpush.msra.mxu2 %v177_v42 }
  0x32   :  { %124 = vmatpush.msra.mxu0 %v89_v28 }
  0x33   :  { %125 = vmatmul.f32.vlgmr.msra.gmra.mxu0 %v88_v29  ;;  %165 = vmatpush.msra.mxu1 %v130_v32 }
  0x34   :  { %201 = vmatpush.msra.mxu2 %v176_v43 }
  0x36   :  { %202 = vmatpush.msra.mxu2 %v175_v44 }
  0x38   :  { %203 = vmatpush.msra.mxu2 %v174_v45 }
  0x3a   :  { %204 = vmatpush.msra.mxu2 %v173_v50 }
  0x3c   :  { %205 = vmatpush.msra.mxu2 %v172_v51 }
  0x3e   :  { %206 = vmatpush.msra.mxu2 %v171_v52 }
  0xb0   :  { %v126_v47 = vpop.f32.mrf.mxu0 }
  0xb1   :  { %v127_v48 = vadd.f32 %v269_v46, %v126_v47 }
  0xb3   :  { %v129_v49 = vmax.f32 %v127_v48, 0.0 }
  0xb5   :  { %166 = vmatmul.f32.vlgmr.msra.gmra.mxu1 %v129_v49 }
 0x132   :  { %v167_v54 = vpop.f32.mrf.mxu1 }
 0x133   :  { %v168_v55 = vadd.f32 %v270_v53, %v167_v54 }
 0x135   :  { %v170_v56 = vmax.f32 %v168_v55, 0.0 }
 0x137   :  { %207 = vmatmul.f32.vlgmr.msra.gmra.mxu2 %v170_v56 }
 0x1ba   :  { %v208_v62 = vpop.f32.mrf.mxu2 }
 0x1bb   :  { %v209_v63 = vadd.f32 %v271_v61, %v208_v62 }
 0x1bd   :  { %v218_v0 = vsel %vm217_vm2, %v209_v63, 0.0 }
 0x1be   :  { %219 = vadd.xlane.f32.xlu0 %v218_v0 }
 0x1d2   :  { %231 = vperm.xlu0 %268, %v209_v63  }
 0x231   :  { %v220_v1 = vpop.xlane.xlu0 %219 }
 0x232   :  { %v221_v2 = vrot.slane %v220_v1, 4 }
 0x234   :  { %v222_v3 = vadd.f32 %v221_v2, %v220_v1 }
 0x236   :  { %v223_v4 = vrot.slane %v222_v3, 2 }
 0x238   :  { %v224_v5 = vadd.f32 %v223_v4, %v222_v3 }
 0x23a   :  { %v225_v6 = vrot.slane %v224_v5, 1 }
 0x23c   :  { %v226_v7 = vadd.f32 %v225_v6, %v224_v5 }
 0x23e   :  { %258 = vpush %v226_v7 }
 0x244   :  { %v232_v8 = vpop.permute.xlu0 %231 }
 0x245   :  { %v234_v9 = vadd.f32 %v232_v8, %v209_v63 }
 0x26f   :  { %s259_s4 = spop %258 }
 0x270   :  { %s228_s6 = smul.f32 0.125, %s259_s4 }
 0x272   :  { %v235_v10 = vstv %s228_s6 }
 0x273   :  { %v236_v11 = vsub.f32 %v234_v9, %v235_v10 }
 0x275   :  { %v237_v12 = vsel %vm215_vm0, %v236_v11, 0.0 }
 0x276   :  { %238 = vst [vmem:[#allocation10] sm:$0xff] %v237_v12 }
 0x277   :  { %249 = dma.vmem_to_hbm [thread:$0]  %s245_s25, 128, %s247_s28, [#allocation4]  }
 0x278   :  { %398 = dma.done.wait [#allocation4], 128  }
 0x279   :  { %399 = vsyncadd [#allocation4], 4294967168 }
 0x27a   :  { %254 = vsyncpa [#allocation3], 1 }
 0x27b   :  { %255 = vsyncpa [#allocation6], 1 }
 0x27c   :  { %256 = vsyncpa [#allocation9], 1 }
 0x27d   :  { %257 = vsyncpa [#allocation4], 1 }

</bundles_post_ra>
